<compile_context>
chip_gen: v6e
topology: v6e:2x2x1
jax: 0.10.0
libtpu: 0.0.40
codegen_flags: <defaults>
</compile_context>

<pallas_src>
import jax
import jax.numpy as jnp
from jax.experimental import pallas as pl
from jax.experimental.pallas import tpu as pltpu


def _endecoder_kernel(x_ref, w1_ref, b1_ref, w2_ref, b2_ref, o_ref):
    # Layer 1: (TR, G*D_in) @ (G*D_in, G*H) -> f32, + bias, ReLU.  Stays in VMEM/vregs.
    h = jnp.dot(x_ref[...], w1_ref[...], preferred_element_type=jnp.float32)
    h = jnp.maximum(h + b1_ref[...], 0.0)
    # Layer 2: cast back to weight dtype (no-op for f32; intentional for bf16 weights).
    y = jnp.dot(h.astype(w2_ref.dtype), w2_ref[...],
                preferred_element_type=jnp.float32)
    o_ref[...] = jnp.maximum(y + b2_ref[...], 0.0).astype(o_ref.dtype)


def _round_up(a, m):
    return ((a + m - 1) // m) * m


def _pick_group(d_in, h, d_out, itemsize, max_weight_bytes=4 << 20):
    """Samples per grouped row: make the input lane axis ~128 wide, keep weights small."""
    g = max(1, -(-128 // d_in))                       # ceil(128 / d_in)
    while g > 1 and g * g * (d_in * h + h * d_out) * itemsize > max_weight_bytes:
        g = (g + 1) // 2
    return g


def _pick_row_tile(rows, cap_rows):
    """Row tile + grid size.  Balanced steps; even step count preferred (v7x megacore)."""
    if rows <= cap_rows:
        return rows, 1                                # single full block (tiny batches)
    n = -(-rows // cap_rows)
    if n % 2:
        n += 1                                        # even split across 2 TensorCores
    tr = _round_up(-(-rows // n), 128)                # 128 grouped rows = 1024 samples
    grid = -(-rows // tr)
    return tr, grid


def endecoder_forward(x, w1, b1, w2, b2, *, max_batch_tile=65536):
    """Fused EnDecoder forward matching torch nn.Linear layout.

    x: (B, D_in) row-major;  w1: (H, D_in), b1: (H,);  w2: (D_out, H), b2: (D_out,).
    Returns (B, D_out) row-major.
    """
    B, D_in = x.shape
    H = w1.shape[0]
    D_out = w2.shape[0]
    dt = x.dtype
    itemsize = jnp.dtype(dt).itemsize

    G = _pick_group(D_in, H, D_out, itemsize)
    gdi, gh, gdo = G * D_in, G * H, G * D_out

    # Block-diagonal weights: kron(I_G, W^T).  Tiny (few hundred KiB), built once.
    eye = jnp.eye(G, dtype=jnp.float32)
    w1big = jnp.kron(eye, w1.astype(jnp.float32).T).astype(dt)   # (G*D_in, G*H)
    w2big = jnp.kron(eye, w2.astype(jnp.float32).T).astype(dt)   # (G*H, G*D_out)
    b1big = jnp.tile(b1.astype(jnp.float32), G).reshape(1, gh)   # f32 epilogue
    b2big = jnp.tile(b2.astype(jnp.float32), G).reshape(1, gdo)

    rows = -(-B // G)
    cap_rows = max(1, max_batch_tile // G)
    tr, grid = _pick_row_tile(rows, cap_rows)
    rows_pad = tr * grid
    b_pad = rows_pad * G

    # Pad only when B isn't already tile-aligned (zero cost for aligned batches).
    xp = x if b_pad == B else jnp.pad(x, ((0, b_pad - B), (0, 0)))
    xg = xp.reshape(rows_pad, gdi)                    # free contiguous reshape

    cost = pl.CostEstimate(
        flops=2 * rows_pad * (gdi * gh + gh * gdo),
        transcendentals=0,
        bytes_accessed=(xg.size + rows_pad * gdo) * itemsize
                       + (w1big.size + w2big.size) * itemsize
                       + (gh + gdo) * 4,
    )

    out_g = pl.pallas_call(
        _endecoder_kernel,
        out_shape=jax.ShapeDtypeStruct((rows_pad, gdo), dt),
        grid=(grid,),
        in_specs=[
            pl.BlockSpec((tr, gdi), lambda i: (i, 0)),    # streamed, double-buffered
            pl.BlockSpec((gdi, gh), lambda i: (0, 0)),    # VMEM-resident weights
            pl.BlockSpec((1, gh), lambda i: (0, 0)),
            pl.BlockSpec((gh, gdo), lambda i: (0, 0)),
            pl.BlockSpec((1, gdo), lambda i: (0, 0)),
        ],
        out_specs=pl.BlockSpec((tr, gdo), lambda i: (i, 0)),
        compiler_params=pltpu.CompilerParams(
            dimension_semantics=("parallel",),            # megacore split on v7x
            vmem_limit_bytes=48 * 1024 * 1024,            # >16/32 MiB defaults, <64 MiB v7x
        ),
        cost_estimate=cost,
    )(xg, w1big, b1big, w2big, b2big)

    out = out_g.reshape(b_pad, D_out)                     # free contiguous reshape
    return out if b_pad == B else out[:B]


def _init_linear(key, out_features, in_features):
    # Deterministic init mimicking torch.nn.Linear default (uniform +-1/sqrt(fan_in)).
    kw, kb = jax.random.split(key)
    bound = 1.0 / (in_features ** 0.5)
    w = jax.random.uniform(kw, (out_features, in_features), jnp.float32, -bound, bound)
    b = jax.random.uniform(kb, (out_features,), jnp.float32, -bound, bound)
    return w, b


if __name__ == "__main__":
    # Shapes consistent with the module: D_in=16, H=32, D_out=8.
    D_in, H, D_out = 16, 32, 8

    key = jax.random.PRNGKey(0)
    kx1, kx2, kx3, kx4, k1, k2 = jax.random.split(key, 6)

    w1, b1 = _init_linear(k1, H, D_in)
    w2, b2 = _init_linear(k2, D_out, H)

    def ref_fwd(xv):
        h = jnp.maximum(xv @ w1.T + b1, 0.0)
        return jnp.maximum(h @ w2.T + b2, 0.0)

    def check(xv, **kw):
        out = jax.block_until_ready(endecoder_forward(xv, w1, b1, w2, b2, **kw))
        assert out.shape == (xv.shape[0], D_out), out.shape
        assert jnp.allclose(out, ref_fwd(xv), atol=1e-4, rtol=1e-4)

    # 1) Tiny batch, single block, no padding (B multiple of the group size 8).
    check(jax.random.normal(kx1, (8, D_in), jnp.float32))

    # 2) Batch not a multiple of the group size -> wrapper pad + slice path.
    check(jax.random.normal(kx2, (10, D_in), jnp.float32))

    # 3) Single-block path with a non-multiple-of-8 row count (full-dim block).
    check(jax.random.normal(kx3, (200, D_in), jnp.float32))

    # 4) Multi-step pipelined grid ("parallel" axis) + tile padding: small tile cap
    #    forces 3 lane-dense 128-row (1024-sample) blocks.
    check(jax.random.normal(kx4, (2304, D_in), jnp.float32), max_batch_tile=1024)

    print("KERNEL_OK")
</pallas_src>

<mosaic_0001>
module attributes {stable_mosaic.version = 11 : i64} {
  func.func @_endecoder_kernel(%arg0: i32, %arg1: memref<1x128xf32, #tpu.memory_space<vmem>>, %arg2: memref<128x256xf32, #tpu.memory_space<vmem>>, %arg3: memref<1x256xf32, #tpu.memory_space<vmem>>, %arg4: memref<256x64xf32, #tpu.memory_space<vmem>>, %arg5: memref<1x64xf32, #tpu.memory_space<vmem>>, %arg6: memref<1x64xf32, #tpu.memory_space<vmem>>) attributes {dimension_semantics = [#tpu.dimension_semantics<parallel>], iteration_bounds = array<i64: 1>, scalar_prefetch = 0 : i64, scratch_operands = 0 : i64, tpu.core_type = #tpu.core_type<tc>, window_params = [{transform_indices = @transform_0, window_bounds = array<i64: 1, 128>}, {pipeline_mode = #tpu.pipeline_mode<synchronous>, transform_indices = @transform_1, window_bounds = array<i64: 128, 256>}, {pipeline_mode = #tpu.pipeline_mode<synchronous>, transform_indices = @transform_2, window_bounds = array<i64: 1, 256>}, {pipeline_mode = #tpu.pipeline_mode<synchronous>, transform_indices = @transform_3, window_bounds = array<i64: 256, 64>}, {pipeline_mode = #tpu.pipeline_mode<synchronous>, transform_indices = @transform_4, window_bounds = array<i64: 1, 64>}, {transform_indices = @transform_5, window_bounds = array<i64: 1, 64>}]} {
    %c0 = arith.constant 0 : index
    %c0_0 = arith.constant 0 : index
    %0 = vector.load %arg1[%c0, %c0_0] : memref<1x128xf32, #tpu.memory_space<vmem>>, vector<1x128xf32>
    %c0_1 = arith.constant 0 : index
    %c0_2 = arith.constant 0 : index
    %1 = vector.load %arg2[%c0_1, %c0_2] : memref<128x256xf32, #tpu.memory_space<vmem>>, vector<128x256xf32>
    %cst = arith.constant dense<0.000000e+00> : vector<1x256xf32>
    %2 = tpu.matmul %0, %1, %cst {dimension_numbers = #tpu.dot_dimension_numbers<[1], [0], [0], [1], [0, 0, 1, 1], [], []>} : vector<1x128xf32>, vector<128x256xf32>, vector<1x256xf32> -> vector<1x256xf32>
    %c0_3 = arith.constant 0 : index
    %c0_4 = arith.constant 0 : index
    %3 = vector.load %arg3[%c0_3, %c0_4] : memref<1x256xf32, #tpu.memory_space<vmem>>, vector<1x256xf32>
    %4 = arith.addf %2, %3 : vector<1x256xf32>
    %cst_5 = arith.constant 0.000000e+00 : f32
    %5 = vector.broadcast %cst_5 : f32 to vector<1x256xf32>
    %6 = arith.maximumf %4, %5 : vector<1x256xf32>
    %c0_6 = arith.constant 0 : index
    %c0_7 = arith.constant 0 : index
    %7 = vector.load %arg4[%c0_6, %c0_7] : memref<256x64xf32, #tpu.memory_space<vmem>>, vector<256x64xf32>
    %cst_8 = arith.constant dense<0.000000e+00> : vector<1x64xf32>
    %8 = tpu.matmul %6, %7, %cst_8 {dimension_numbers = #tpu.dot_dimension_numbers<[1], [0], [0], [1], [0, 0, 1, 1], [], []>} : vector<1x256xf32>, vector<256x64xf32>, vector<1x64xf32> -> vector<1x64xf32>
    %c0_9 = arith.constant 0 : index
    %c0_10 = arith.constant 0 : index
    %9 = vector.load %arg5[%c0_9, %c0_10] : memref<1x64xf32, #tpu.memory_space<vmem>>, vector<1x64xf32>
    %10 = arith.addf %8, %9 : vector<1x64xf32>
    %cst_11 = arith.constant 0.000000e+00 : f32
    %11 = vector.broadcast %cst_11 : f32 to vector<1x64xf32>
    %12 = arith.maximumf %10, %11 : vector<1x64xf32>
    %c0_12 = arith.constant 0 : index
    %c0_13 = arith.constant 0 : index
    %13 = vector.load %arg6[%c0_12, %c0_13] : memref<1x64xf32, #tpu.memory_space<vmem>>, vector<1x64xf32>
    tpu.vector_store %arg6[%c0_12, %c0_13], %12 {strides = array<i32>} : memref<1x64xf32, #tpu.memory_space<vmem>>, vector<1x64xf32>,
    return
  }
  func.func @transform_0(%arg0: i32) -> (i32, i32) {
    %c0_i32 = arith.constant 0 : i32
    %c0_i32_0 = arith.constant 0 : i32
    return %arg0, %c0_i32 : i32, i32
  }
  func.func @transform_1(%arg0: i32) -> (i32, i32) {
    %c0_i32 = arith.constant 0 : i32
    %c0_i32_0 = arith.constant 0 : i32
    %c0_i32_1 = arith.constant 0 : i32
    return %c0_i32, %c0_i32_0 : i32, i32
  }
  func.func @transform_2(%arg0: i32) -> (i32, i32) {
    %c0_i32 = arith.constant 0 : i32
    %c0_i32_0 = arith.constant 0 : i32
    %c0_i32_1 = arith.constant 0 : i32
    return %c0_i32, %c0_i32_0 : i32, i32
  }
  func.func @transform_3(%arg0: i32) -> (i32, i32) {
    %c0_i32 = arith.constant 0 : i32
    %c0_i32_0 = arith.constant 0 : i32
    %c0_i32_1 = arith.constant 0 : i32
    return %c0_i32, %c0_i32_0 : i32, i32
  }
  func.func @transform_4(%arg0: i32) -> (i32, i32) {
    %c0_i32 = arith.constant 0 : i32
    %c0_i32_0 = arith.constant 0 : i32
    %c0_i32_1 = arith.constant 0 : i32
    return %c0_i32, %c0_i32_0 : i32, i32
  }
  func.func @transform_5(%arg0: i32) -> (i32, i32) {
    %c0_i32 = arith.constant 0 : i32
    %c0_i32_0 = arith.constant 0 : i32
    return %arg0, %c0_i32 : i32, i32
  }
}

</mosaic_0001>

<bundles_post_ra>
// kernel: tpu_custom_call.1
= control target key start
LH: loop header
LB: loop body
LE: loop exit
PB: predicated region body
PF: predicated region fallthrough
CT: control target
= control target key end

     0   :  { %v318_v4 = vmov 0.0   ;;  %s554_s0 = inlined_call_operand.vmem [shape: f32[1,128], index: 0, kind: input, shape index: {}]   ;;  %s555_s1 = inlined_call_operand.vmem [shape: f32[128,256], index: 1, kind: input, shape index: {}]   ;;  %s556_s2 = inlined_call_operand.vmem [shape: f32[1,256], index: 2, kind: input, shape index: {}]   ;;  %s557_s3 = inlined_call_operand.vmem [shape: f32[256,64], index: 3, kind: input, shape index: {}]   ;;  %s558_s4 = inlined_call_operand.vmem [shape: f32[1,64], index: 4, kind: input, shape index: {}]   ;;  %s559_s5 = inlined_call_operand.hbm [shape: f32[1,64], index: 5, kind: output, shape index: {}]  }
   0x1   :  { %v53_v0 = vld [vmem:[%s555_s1 + $0xf8] sm:$0xff]  ;;  %v52_v1 = vld [vmem:[%s555_s1 + $0xf0] sm:$0xff]  ;;  %v51_v2 = vld [vmem:[%s555_s1 + $0xe8] sm:$0xff]  ;;  %130 = vmatprep.mubr.f32.mxu0 %v318_v4 }
   0x2   :  { %66 = vmatprep.subr.mxu0 %v53_v0  ;;  %v50_v3 = vld [vmem:[%s555_s1 + $0xe0] sm:$0xff]  ;;  %v49_v5 = vld [vmem:[%s555_s1 + $0xd8] sm:$0xff]  ;;  %v48_v6 = vld [vmem:[%s555_s1 + $0xd0] sm:$0xff] }
   0x3   :  { %67 = vmatpush1.msra.mxu0 %v52_v1  ;;  %v47_v7 = vld [vmem:[%s555_s1 + $0xc8] sm:$0xff]  ;;  %v46_v8 = vld [vmem:[%s555_s1 + $0xc0] sm:$0xff]  ;;  %v45_v9 = vld [vmem:[%s555_s1 + $0xb8] sm:$0xff] }
   0x4   :  { %68 = vmatprep.subr.mxu0 %v51_v2  ;;  %v44_v10 = vld [vmem:[%s555_s1 + $0xb0] sm:$0xff]  ;;  %v43_v11 = vld [vmem:[%s555_s1 + $0xa8] sm:$0xff]  ;;  %v42_v12 = vld [vmem:[%s555_s1 + $0xa0] sm:$0xff] }
   0x5   :  { %69 = vmatpush1.msra.mxu0 %v50_v3  ;;  %v41_v13 = vld [vmem:[%s555_s1 + $0x98] sm:$0xff]  ;;  %v40_v14 = vld [vmem:[%s555_s1 + $0x90] sm:$0xff]  ;;  %v39_v18 = vld [vmem:[%s555_s1 + $0x88] sm:$0xff] }
   0x6   :  { %70 = vmatprep.subr.mxu0 %v49_v5  ;;  %v170_v15 = vld [vmem:[%s557_s3 + $0xf8] sm:$0xff]  ;;  %v169_v17 = vld [vmem:[%s557_s3 + $0xf0] sm:$0xff]  ;;  %v38_v20 = vld [vmem:[%s555_s1 + $0x80] sm:$0xff] }
   0x7   :  { %71 = vmatpush1.msra.mxu0 %v48_v6  ;;  %v154_v16 = vld [vmem:[%s557_s3 + $0x78] sm:$0xff]  ;;  %259 = vmatprep.subr.mxu1 %v170_v15  ;;  %v153_v19 = vld [vmem:[%s557_s3 + $0x70] sm:$0xff]  ;;  %v168_v21 = vld [vmem:[%s557_s3 + $0xe8] sm:$0xff] }
   0x8   :  { %72 = vmatprep.subr.mxu0 %v47_v7  ;;  %260 = vmatpush3.msra.mxu1 %v154_v16  ;;  %v37_v22 = vld [vmem:[%s555_s1 + $0x78] sm:$0xff]  ;;  %v152_v23 = vld [vmem:[%s557_s3 + $0x68] sm:$0xff]  ;;  %v36_v24 = vld [vmem:[%s555_s1 + $0x70] sm:$0xff] }
   0x9   :  { %73 = vmatpush1.msra.mxu0 %v46_v8  ;;  %261 = vmatprep.subr.mxu1 %v169_v17  ;;  %v167_v25 = vld [vmem:[%s557_s3 + $0xe0] sm:$0xff]  ;;  %v35_v26 = vld [vmem:[%s555_s1 + $0x68] sm:$0xff]  ;;  %v166_v29 = vld [vmem:[%s557_s3 + $0xd8] sm:$0xff] }
   0xa   :  { %74 = vmatprep.subr.mxu0 %v45_v9  ;;  %262 = vmatpush3.msra.mxu1 %v153_v19  ;;  %v151_v27 = vld [vmem:[%s557_s3 + $0x60] sm:$0xff]  ;;  %v33_v30 = vld [vmem:[%s555_s1 + $0x58] sm:$0xff]  ;;  %v32_v32 = vld [vmem:[%s555_s1 + $0x50] sm:$0xff] }
   0xb   :  { %75 = vmatpush1.msra.mxu0 %v44_v10  ;;  %263 = vmatprep.subr.mxu1 %v168_v21  ;;  %v34_v28 = vld [vmem:[%s555_s1 + $0x60] sm:$0xff]  ;;  %v150_v31 = vld [vmem:[%s557_s3 + $0x58] sm:$0xff]  ;;  %v165_v33 = vld [vmem:[%s557_s3 + $0xd0] sm:$0xff] }
   0xc   :  { %76 = vmatprep.subr.mxu0 %v43_v11  ;;  %264 = vmatpush3.msra.mxu1 %v152_v23 }
   0xd   :  { %77 = vmatpush1.msra.mxu0 %v42_v12  ;;  %265 = vmatprep.subr.mxu1 %v167_v25 }
   0xe   :  { %78 = vmatprep.subr.mxu0 %v41_v13  ;;  %266 = vmatpush3.msra.mxu1 %v151_v27 }
   0xf   :  { %79 = vmatpush1.msra.mxu0 %v40_v14 }
  0x10   :  { %80 = vmatprep.subr.mxu0 %v39_v18 }
  0x11   :  { %81 = vmatpush1.msra.mxu0 %v38_v20 }
  0x12   :  { %82 = vmatprep.subr.mxu0 %v37_v22 }
  0x13   :  { %83 = vmatpush1.msra.mxu0 %v36_v24 }
  0x14   :  { %84 = vmatprep.subr.mxu0 %v35_v26 }
  0x15   :  { %10 = vsyncpa [#allocation3], 0  ;;  %85 = vmatpush1.msra.mxu0 %v34_v28  ;;  %v31_v34 = vld [vmem:[%s555_s1 + $0x48] sm:$0xff]  ;;  %267 = vmatprep.subr.mxu1 %v166_v29  ;;  %v149_v35 = vld [vmem:[%s557_s3 + $0x50] sm:$0xff]  ;;  %v56_v2 = vlaneseq  ;;  %s319_s24 = smov [#allocation2]   ;;  %vm243_vm0 = vcmask 516096  }
  0x16   :  { %86 = vmatprep.subr.mxu0 %v33_v30  ;;  %v30_v36 = vld [vmem:[%s555_s1 + $0x40] sm:$0xff]  ;;  %268 = vmatpush3.msra.mxu1 %v150_v31  ;;  %v164_v37 = vld [vmem:[%s557_s3 + $0xc8] sm:$0xff]  ;;  %v29_v38 = vld [vmem:[%s555_s1 + $0x38] sm:$0xff] }
  0x17   :  { %87 = vmatpush1.msra.mxu0 %v32_v32  ;;  %269 = vmatprep.subr.mxu1 %v165_v33  ;;  %v148_v39 = vld [vmem:[%s557_s3 + $0x48] sm:$0xff]  ;;  %v28_v40 = vld [vmem:[%s555_s1 + $0x30] sm:$0xff]  ;;  %v163_v41 = vld [vmem:[%s557_s3 + $0xc0] sm:$0xff]  ;;  %v57_v3 = vshrl.u32 %v56_v2, 7 }
  0x18   :  { %88 = vmatprep.subr.mxu0 %v31_v34  ;;  %270 = vmatpush3.msra.mxu1 %v149_v35  ;;  %v27_v42 = vld [vmem:[%s555_s1 + $0x28] sm:$0xff]  ;;  %v147_v43 = vld [vmem:[%s557_s3 + $0x40] sm:$0xff]  ;;  %v162_v45 = vld [vmem:[%s557_s3 + $0xb8] sm:$0xff] }
  0x19   :  { %89 = vmatpush1.msra.mxu0 %v30_v36  ;;  %271 = vmatprep.subr.mxu1 %v164_v37  ;;  %v26_v44 = vld [vmem:[%s555_s1 + $0x20] sm:$0xff]  ;;  %v25_v46 = vld [vmem:[%s555_s1 + $0x18] sm:$0xff]  ;;  %v24_v48 = vld [vmem:[%s555_s1 + $0x10] sm:$0xff]  ;;  %v58_v4 = vsub.s32 0, %v57_v3  ;;  %v62_v6 = vsub.s32 1, %v57_v3 }
  0x1a   :  { %90 = vmatprep.subr.mxu0 %v29_v38  ;;  %272 = vmatpush3.msra.mxu1 %v148_v39  ;;  %v146_v47 = vld [vmem:[%s557_s3 + $0x38] sm:$0xff]  ;;  %v161_v49 = vld [vmem:[%s557_s3 + $0xb0] sm:$0xff]  ;;  %v23_v50 = vld [vmem:[%s555_s1 + $0x8] sm:$0xff] }
  0x1b   :  { %91 = vmatpush1.msra.mxu0 %v28_v40  ;;  %273 = vmatprep.subr.mxu1 %v163_v41  ;;  %v145_v51 = vld [vmem:[%s557_s3 + $0x30] sm:$0xff]  ;;  %v22_v52 = vld [vmem:[%s555_s1] sm:$0xff]  ;;  %v160_v53 = vld [vmem:[%s557_s3 + $0xa8] sm:$0xff] }
  0x1c   :  { %92 = vmatprep.subr.mxu0 %v27_v42  ;;  %274 = vmatpush3.msra.mxu1 %v147_v43  ;;  %v21_v54 = vld [vmem:[%s554_s0] sm:$0x1]  ;;  %v144_v55 = vld [vmem:[%s557_s3 + $0x28] sm:$0xff]  ;;  %v158_v58 = vld [vmem:[%s557_s3 + $0x98] sm:$0xff] }
  0x1d   :  { %93 = vmatpush1.msra.mxu0 %v26_v44  ;;  %275 = vmatprep.subr.mxu1 %v162_v45  ;;  %v159_v56 = vld [vmem:[%s557_s3 + $0xa0] sm:$0xff]  ;;  %v142_v59 = vld [vmem:[%s557_s3 + $0x18] sm:$0xff]  ;;  %v157_v60 = vld [vmem:[%s557_s3 + $0x90] sm:$0xff] }
  0x1e   :  { %94 = vmatprep.subr.mxu0 %v25_v46  ;;  %276 = vmatpush3.msra.mxu1 %v146_v47  ;;  %v143_v57 = vld [vmem:[%s557_s3 + $0x20] sm:$0xff]  ;;  %v141_v61 = vld [vmem:[%s557_s3 + $0x10] sm:$0xff]  ;;  %v156_v62 = vld [vmem:[%s557_s3 + $0x88] sm:$0xff] }
  0x1f   :  { %95 = vmatpush1.msra.mxu0 %v24_v48  ;;  %277 = vmatprep.subr.mxu1 %v161_v49  ;;  %v140_v63 = vld [vmem:[%s557_s3 + $0x8] sm:$0xff]  ;;  %v155_v0 = vld [vmem:[%s557_s3 + $0x80] sm:$0xff] }
  0x20   :  { %96 = vmatprep.subr.mxu0 %v23_v50  ;;  %278 = vmatpush3.msra.mxu1 %v145_v51  ;;  %v139_v1 = vld [vmem:[%s557_s3] sm:$0xff] }
  0x21   :  { %97 = vmatpush1.msra.mxu0 %v22_v52  ;;  %279 = vmatprep.subr.mxu1 %v160_v53  ;;  %v54_v5 = vld [vmem:[%s556_s2] sm:$0x3]  ;;  %s251_s2 = sshll.u32 %s319_s24, 4  ;;  %s252_s2 = int_to_ptr.vmem [resolvable:$true] %s251_s2 }
  0x22   :  { %131 = vmatmul.mubr.f32.vlgmr.msra.gmra.mxu0 %v21_v54  ;;  %280 = vmatpush3.msra.mxu1 %v144_v55  ;;  %v59_v7 = vrot.slane %v54_v5, %v58_v4  ;;  %v63_v8 = vrot.slane %v54_v5, %v62_v6  ;;  %v171_v16 = vld [vmem:[%s558_s4] sm:$0x1]  ;;  %s296_s25 = scalar_lea.vmem %s252_s2, 16  ;;  %s300_s26 = scalar_lea.vmem %s252_s2, 32 }
  0x23   :  { %281 = vmatprep.subr.mxu1 %v159_v56  ;;  %p297_p0 = scmp.ne.s32.totalorder %s252_s2, %s296_s25  ;;  %p301_p1 = scmp.lt.s32.totalorder %s252_s2, %s252_s2 }
  0x24   :  { %282 = vmatpush3.msra.mxu1 %v143_v57  ;;  %p302_p2 = scmp.lt.s32.totalorder %s300_s26, %s296_s25 }
  0x25   :  { %283 = vmatprep.subr.mxu1 %v158_v58 }
  0x26   :  { %284 = vmatpush3.msra.mxu1 %v142_v59  ;;  %p303_p3 = por %p302_p2, %p301_p1 }
  0x27   :  { %285 = vmatprep.subr.mxu1 %v157_v60 }
  0x28   :  { %286 = vmatpush3.msra.mxu1 %v141_v61  ;;  %p304_p4 = pnand %p303_p3, %p297_p0 }
  0x29   :  { %287 = vmatprep.subr.mxu1 %v156_v62 }
  0x2a   :  { %288 = vmatpush3.msra.mxu1 %v140_v63 }
  0x2b   :  { %289 = vmatprep.subr.mxu1 %v155_v0 }
  0x2c   :  { %290 = vmatpush3.msra.mxu1 %v139_v1 }
  0xe2   :  { %v132_v9 = vpop.f32.mrf.mxu0 }
  0xe3   :  { %v133_v10 = vadd.f32 %v132_v9, %v59_v7 }
  0xe4   :  { %v134_v11 = vpop.f32.mrf.mxu0 }
  0xe5   :  { %v135_v12 = vadd.f32 %v134_v11, %v63_v8  ;;  %v137_v14 = vmax.f32 %v133_v10, 0.0 }
  0xe7   :  { %v138_v13 = vmax.f32 %v135_v12, 0.0 }
  0xe9   :  { %236 = vmatprep.mubr.f32.mxu1 %v138_v13 }
  0xea   :  { %237 = vmatmul.mubr.f32.vlgmr.msra.gmra.mxu1 %v137_v14 }
 0x1aa   :  { %v291_v15 = vpop.f32.mrf.mxu1 }
 0x1ac   :  { %v292_v17 = vpop.f32.mrf.mxu1 }
 0x1ad   :  { %v293_v18 = vadd.f32 %v292_v17, %v291_v15 }
 0x1af   :  { %v239_v19 = vadd.f32 %v293_v18, %v171_v16 }
 0x1b1   :  { %v242_v20 = vmax.f32 %v239_v19, 0.0 }
 0x1b3   :  { %244 = vst.msk [vmem:[#allocation2] sm:$0x1] %vm243_vm0, %v242_v20 }
 0x1b4   :  { %307 = shalt.err (!%p304_p4)
}
 0x1b5   :  { %254 = dma.vmem_to_hbm [thread:$0]  %s252_s2, 16, %s559_s5, [#allocation3]  }
 0x1b6   :  { %316 = dma.done.wait [#allocation3], 16  }
 0x1b7   :  { %317 = vsyncadd [#allocation3], 4294967280 }
 0x1b8   :  { %258 = vsyncpa [#allocation3], 1 }

</bundles_post_ra>
